<compile_context>
chip_gen: v7x
topology: tpu7x:2x2x1
jax: 0.10.0
libtpu: 0.0.40
codegen_flags: <defaults>
</compile_context>

<pallas_src>
import jax
import jax.numpy as jnp
from jax import lax
from jax.experimental import pallas as pl
from jax.experimental.pallas import tpu as pltpu


def _round_up(x: int, m: int) -> int:
    return ((x + m - 1) // m) * m


def _choose_tile(batch: int, block_b: int):
    """Pick the batch tile (multiple of 128 when tiling) and #blocks."""
    block_b = max(128, _round_up(block_b, 128))
    if batch <= 128:
        return batch, 1                        # single block == full array dims
    # Aim for >= 4 grid steps on large batches: on v7x (2 TensorCores) each
    # core then gets >= 2 steps so DMA of step i+1 overlaps compute of step i.
    target_blocks = max(pl.cdiv(batch, block_b), 4)
    tb = min(block_b, max(128, _round_up(pl.cdiv(batch, target_blocks), 128)))
    return tb, pl.cdiv(batch, tb)


def _qvalue_kernel(obs_ref, act_ref, w1o_ref, w1a_ref, b1_ref,
                   w2_ref, b2_ref, w3_ref, b3_ref, o_ref):
    # obs_ref: (TB, obs_dim) native dtype    w1o_ref: (obs_dim, H) compute dtype
    # act_ref: (TB, act_dim) native dtype    w1a_ref: (act_dim, H) compute dtype
    # b1_ref / b2_ref: (1, H) f32            w2_ref: (H, H)   w3_ref: (1, H)
    # b3_ref: (1, 1) f32 in SMEM             o_ref:  (1, TB) f32, lane-dense
    cdt = w2_ref.dtype                        # matmul operand dtype (bf16/f32)

    # Layer 1: split matmul == concat([obs, act], 1) @ W1.  Activations are
    # cast in-register (free VPU op) so HBM traffic stays at native width.
    h1 = jnp.dot(obs_ref[...].astype(cdt), w1o_ref[...],
                 preferred_element_type=jnp.float32)
    h1 = h1 + jnp.dot(act_ref[...].astype(cdt), w1a_ref[...],
                      preferred_element_type=jnp.float32)
    h1 = jnp.maximum(h1 + b1_ref[...], 0.0)   # bias add / ReLU in f32

    # Layer 2.
    h2 = jnp.dot(h1.astype(cdt), w2_ref[...],
                 preferred_element_type=jnp.float32)
    h2 = jnp.maximum(h2 + b2_ref[...], 0.0)

    # Layer 3 (out_features == 1): contract on H with w3 as the LHS so the
    # result is already the lane-dense (1, TB) row we store.
    q_row = lax.dot_general(w3_ref[...], h2.astype(cdt),
                            (((1,), (1,)), ((), ())),
                            preferred_element_type=jnp.float32)
    o_ref[...] = (q_row + b3_ref[0, 0]).astype(o_ref.dtype)


def qvalue_net_forward(observation, action, params, *,
                       block_b: int = 256, compute_dtype=jnp.bfloat16):
    """observation: (B, obs_dim), action: (B, act_dim) -> (B, 1) float32."""
    w1o, w1a, b1, w2, b2, w3_row, b3 = params
    B, obs_dim = observation.shape
    act_dim = action.shape[1]

    # Only the tiny, VMEM-resident weights are pre-cast (amortized over the
    # whole grid); obs/act stay in their native dtype in HBM.
    w1o = w1o.astype(compute_dtype)
    w1a = w1a.astype(compute_dtype)
    w2 = w2.astype(compute_dtype)
    w3_row = w3_row.astype(compute_dtype)

    tb, nblk = _choose_tile(B, block_b)

    def row_spec(ncols):                       # batch-tiled activation operand
        return pl.BlockSpec((tb, ncols), lambda i: (i, 0))

    def resident_spec(a):                      # constant index -> VMEM-resident
        return pl.BlockSpec(a.shape, lambda i: (0, 0))

    out = pl.pallas_call(
        _qvalue_kernel,
        out_shape=jax.ShapeDtypeStruct((1, nblk * tb), jnp.float32),
        grid=(nblk,),
        in_specs=[
            row_spec(obs_dim), row_spec(act_dim),
            resident_spec(w1o), resident_spec(w1a), resident_spec(b1),
            resident_spec(w2), resident_spec(b2), resident_spec(w3_row),
            pl.BlockSpec(memory_space=pltpu.MemorySpace.SMEM),   # b3 scalar
        ],
        out_specs=pl.BlockSpec((1, tb), lambda i: (0, i)),
        compiler_params=pltpu.CompilerParams(
            dimension_semantics=("parallel",)),
    )(observation, action, w1o, w1a, b1, w2, b2, w3_row, b3)

    # Lane-dense (1, nblk*tb) row -> (B, 1) column; pure layout plumbing.
    return out.reshape(-1)[:B].reshape(B, 1)


def init_params(key, observation_dim, hidden_dim, action_dim):
    """nn.Linear-style uniform init; fc1 weight split into obs/act halves and
    all weights stored pre-transposed to (in_features, out_features)."""
    in1 = observation_dim + action_dim
    k = jax.random.split(key, 8)

    def uni(kk, shape, fan_in):
        bound = 1.0 / jnp.sqrt(fan_in)
        return jax.random.uniform(kk, shape, jnp.float32, -bound, bound)

    w1o = uni(k[0], (observation_dim, hidden_dim), in1)
    w1a = uni(k[1], (action_dim, hidden_dim), in1)
    b1 = uni(k[2], (1, hidden_dim), in1)
    w2 = uni(k[3], (hidden_dim, hidden_dim), hidden_dim)
    b2 = uni(k[4], (1, hidden_dim), hidden_dim)
    w3_row = uni(k[5], (1, hidden_dim), hidden_dim)   # fc3 weight as a row
    b3 = uni(k[6], (1, 1), hidden_dim)
    return (w1o, w1a, b1, w2, b2, w3_row, b3)


def _reference_forward(observation, action, params):
    w1o, w1a, b1, w2, b2, w3_row, b3 = params
    x = jnp.concatenate([observation, action], axis=1)
    w1 = jnp.concatenate([w1o, w1a], axis=0)
    h1 = jnp.maximum(x @ w1 + b1, 0.0)
    h2 = jnp.maximum(h1 @ w2 + b2, 0.0)
    return h2 @ w3_row.T + b3


if __name__ == "__main__":
    batch = 2
    observation_dim = 16
    action_dim = 8
    hidden_dim = 32

    key = jax.random.PRNGKey(0)
    k_obs, k_act, k_params, k_obs2, k_act2 = jax.random.split(key, 5)

    observation = jax.random.normal(k_obs, (batch, observation_dim), jnp.float32)
    action = jax.random.normal(k_act, (batch, action_dim), jnp.float32)
    params = init_params(k_params, observation_dim, hidden_dim, action_dim)

    # Exact-semantics f32 path (small batch, single full-dim tile).
    q = qvalue_net_forward(observation, action, params,
                           compute_dtype=jnp.float32)
    q = jax.block_until_ready(q)
    q_ref = _reference_forward(observation, action, params)
    assert q.shape == (batch, 1)
    assert jnp.allclose(q, q_ref, atol=1e-5, rtol=1e-5)

    # Larger ragged batch: multi-tile parallel grid, bf16 matmul operands,
    # clamped partial last tile (no jnp.pad copy).
    big_b = 1000
    obs_big = jax.random.normal(k_obs2, (big_b, observation_dim), jnp.float32)
    act_big = jax.random.normal(k_act2, (big_b, action_dim), jnp.float32)
    q_big = qvalue_net_forward(obs_big, act_big, params,
                               block_b=256, compute_dtype=jnp.bfloat16)
    q_big = jax.block_until_ready(q_big)
    q_big_ref = _reference_forward(obs_big, act_big, params)
    assert q_big.shape == (big_b, 1)
    assert jnp.allclose(q_big, q_big_ref, atol=5e-2, rtol=5e-2)

    print("KERNEL_OK")
</pallas_src>

<mosaic_0001>
module attributes {stable_mosaic.version = 11 : i64} {
  func.func @_qvalue_kernel(%arg0: i32, %arg1: memref<2x16xf32, #tpu.memory_space<vmem>>, %arg2: memref<2x8xf32, #tpu.memory_space<vmem>>, %arg3: memref<16x32xf32, #tpu.memory_space<vmem>>, %arg4: memref<8x32xf32, #tpu.memory_space<vmem>>, %arg5: memref<1x32xf32, #tpu.memory_space<vmem>>, %arg6: memref<32x32xf32, #tpu.memory_space<vmem>>, %arg7: memref<1x32xf32, #tpu.memory_space<vmem>>, %arg8: memref<1x32xf32, #tpu.memory_space<vmem>>, %arg9: memref<1x1xf32, #tpu.memory_space<smem>>, %arg10: memref<1x2xf32, #tpu.memory_space<vmem>>) attributes {dimension_semantics = [#tpu.dimension_semantics<parallel>], iteration_bounds = array<i64: 1>, scalar_prefetch = 0 : i64, scratch_operands = 0 : i64, tpu.core_type = #tpu.core_type<tc>, window_params = [{transform_indices = @transform_0, window_bounds = array<i64: 2, 16>}, {transform_indices = @transform_1, window_bounds = array<i64: 2, 8>}, {pipeline_mode = #tpu.pipeline_mode<synchronous>, transform_indices = @transform_2, window_bounds = array<i64: 16, 32>}, {pipeline_mode = #tpu.pipeline_mode<synchronous>, transform_indices = @transform_3, window_bounds = array<i64: 8, 32>}, {pipeline_mode = #tpu.pipeline_mode<synchronous>, transform_indices = @transform_4, window_bounds = array<i64: 1, 32>}, {pipeline_mode = #tpu.pipeline_mode<synchronous>, transform_indices = @transform_5, window_bounds = array<i64: 32, 32>}, {pipeline_mode = #tpu.pipeline_mode<synchronous>, transform_indices = @transform_6, window_bounds = array<i64: 1, 32>}, {pipeline_mode = #tpu.pipeline_mode<synchronous>, transform_indices = @transform_7, window_bounds = array<i64: 1, 32>}, {transform_indices = @transform_8, window_bounds = array<i64: 1, 1>}, {transform_indices = @transform_9, window_bounds = array<i64: 1, 2>}]} {
    %c0 = arith.constant 0 : index
    %c0_0 = arith.constant 0 : index
    %0 = vector.load %arg1[%c0, %c0_0] : memref<2x16xf32, #tpu.memory_space<vmem>>, vector<2x16xf32>
    %c0_1 = arith.constant 0 : index
    %c0_2 = arith.constant 0 : index
    %1 = vector.load %arg3[%c0_1, %c0_2] : memref<16x32xf32, #tpu.memory_space<vmem>>, vector<16x32xf32>
    %cst = arith.constant dense<0.000000e+00> : vector<2x32xf32>
    %2 = tpu.matmul %0, %1, %cst {dimension_numbers = #tpu.dot_dimension_numbers<[1], [0], [0], [1], [0, 0, 1, 1], [], []>} : vector<2x16xf32>, vector<16x32xf32>, vector<2x32xf32> -> vector<2x32xf32>
    %c0_3 = arith.constant 0 : index
    %c0_4 = arith.constant 0 : index
    %3 = vector.load %arg2[%c0_3, %c0_4] : memref<2x8xf32, #tpu.memory_space<vmem>>, vector<2x8xf32>
    %c0_5 = arith.constant 0 : index
    %c0_6 = arith.constant 0 : index
    %4 = vector.load %arg4[%c0_5, %c0_6] : memref<8x32xf32, #tpu.memory_space<vmem>>, vector<8x32xf32>
    %cst_7 = arith.constant dense<0.000000e+00> : vector<2x32xf32>
    %5 = tpu.matmul %3, %4, %cst_7 {dimension_numbers = #tpu.dot_dimension_numbers<[1], [0], [0], [1], [0, 0, 1, 1], [], []>} : vector<2x8xf32>, vector<8x32xf32>, vector<2x32xf32> -> vector<2x32xf32>
    %6 = arith.addf %2, %5 : vector<2x32xf32>
    %c0_8 = arith.constant 0 : index
    %c0_9 = arith.constant 0 : index
    %7 = vector.load %arg5[%c0_8, %c0_9] : memref<1x32xf32, #tpu.memory_space<vmem>>, vector<1x32xf32>
    %8 = vector.broadcast %7 : vector<1x32xf32> to vector<2x32xf32>
    %9 = arith.addf %6, %8 : vector<2x32xf32>
    %cst_10 = arith.constant 0.000000e+00 : f32
    %10 = vector.broadcast %cst_10 : f32 to vector<2x32xf32>
    %11 = arith.maximumf %9, %10 : vector<2x32xf32>
    %c0_11 = arith.constant 0 : index
    %c0_12 = arith.constant 0 : index
    %12 = vector.load %arg6[%c0_11, %c0_12] : memref<32x32xf32, #tpu.memory_space<vmem>>, vector<32x32xf32>
    %cst_13 = arith.constant dense<0.000000e+00> : vector<2x32xf32>
    %13 = tpu.matmul %11, %12, %cst_13 {dimension_numbers = #tpu.dot_dimension_numbers<[1], [0], [0], [1], [0, 0, 1, 1], [], []>} : vector<2x32xf32>, vector<32x32xf32>, vector<2x32xf32> -> vector<2x32xf32>
    %c0_14 = arith.constant 0 : index
    %c0_15 = arith.constant 0 : index
    %14 = vector.load %arg7[%c0_14, %c0_15] : memref<1x32xf32, #tpu.memory_space<vmem>>, vector<1x32xf32>
    %15 = vector.broadcast %14 : vector<1x32xf32> to vector<2x32xf32>
    %16 = arith.addf %13, %15 : vector<2x32xf32>
    %cst_16 = arith.constant 0.000000e+00 : f32
    %17 = vector.broadcast %cst_16 : f32 to vector<2x32xf32>
    %18 = arith.maximumf %16, %17 : vector<2x32xf32>
    %c0_17 = arith.constant 0 : index
    %c0_18 = arith.constant 0 : index
    %19 = vector.load %arg8[%c0_17, %c0_18] : memref<1x32xf32, #tpu.memory_space<vmem>>, vector<1x32xf32>
    %cst_19 = arith.constant dense<0.000000e+00> : vector<1x2xf32>
    %20 = tpu.matmul %19, %18, %cst_19 {dimension_numbers = #tpu.dot_dimension_numbers<[1], [1], [0], [0], [0, 0, 1, 0], [], []>} : vector<1x32xf32>, vector<2x32xf32>, vector<1x2xf32> -> vector<1x2xf32>
    %c0_20 = arith.constant 0 : index
    %c0_21 = arith.constant 0 : index
    %21 = memref.load %arg9[%c0_20, %c0_21] : memref<1x1xf32, #tpu.memory_space<smem>>
    %22 = vector.broadcast %21 : f32 to vector<1x2xf32>
    %23 = arith.addf %20, %22 : vector<1x2xf32>
    %c0_22 = arith.constant 0 : index
    %c0_23 = arith.constant 0 : index
    %24 = vector.load %arg10[%c0_22, %c0_23] : memref<1x2xf32, #tpu.memory_space<vmem>>, vector<1x2xf32>
    tpu.vector_store %arg10[%c0_22, %c0_23], %23 {strides = array<i32>} : memref<1x2xf32, #tpu.memory_space<vmem>>, vector<1x2xf32>,
    return
  }
  func.func @transform_0(%arg0: i32) -> (i32, i32) {
    %c0_i32 = arith.constant 0 : i32
    %c0_i32_0 = arith.constant 0 : i32
    return %arg0, %c0_i32 : i32, i32
  }
  func.func @transform_1(%arg0: i32) -> (i32, i32) {
    %c0_i32 = arith.constant 0 : i32
    %c0_i32_0 = arith.constant 0 : i32
    return %arg0, %c0_i32 : i32, i32
  }
  func.func @transform_2(%arg0: i32) -> (i32, i32) {
    %c0_i32 = arith.constant 0 : i32
    %c0_i32_0 = arith.constant 0 : i32
    %c0_i32_1 = arith.constant 0 : i32
    return %c0_i32, %c0_i32_0 : i32, i32
  }
  func.func @transform_3(%arg0: i32) -> (i32, i32) {
    %c0_i32 = arith.constant 0 : i32
    %c0_i32_0 = arith.constant 0 : i32
    %c0_i32_1 = arith.constant 0 : i32
    return %c0_i32, %c0_i32_0 : i32, i32
  }
  func.func @transform_4(%arg0: i32) -> (i32, i32) {
    %c0_i32 = arith.constant 0 : i32
    %c0_i32_0 = arith.constant 0 : i32
    %c0_i32_1 = arith.constant 0 : i32
    return %c0_i32, %c0_i32_0 : i32, i32
  }
  func.func @transform_5(%arg0: i32) -> (i32, i32) {
    %c0_i32 = arith.constant 0 : i32
    %c0_i32_0 = arith.constant 0 : i32
    %c0_i32_1 = arith.constant 0 : i32
    return %c0_i32, %c0_i32_0 : i32, i32
  }
  func.func @transform_6(%arg0: i32) -> (i32, i32) {
    %c0_i32 = arith.constant 0 : i32
    %c0_i32_0 = arith.constant 0 : i32
    %c0_i32_1 = arith.constant 0 : i32
    return %c0_i32, %c0_i32_0 : i32, i32
  }
  func.func @transform_7(%arg0: i32) -> (i32, i32) {
    %c0_i32 = arith.constant 0 : i32
    %c0_i32_0 = arith.constant 0 : i32
    %c0_i32_1 = arith.constant 0 : i32
    return %c0_i32, %c0_i32_0 : i32, i32
  }
  func.func @transform_8(%arg0: i32) -> (i32, i32) {
    %c0_i32 = arith.constant 0 : i32
    %c0_i32_0 = arith.constant 0 : i32
    %c0_i32_1 = arith.constant 0 : i32
    return %c0_i32, %c0_i32_0 : i32, i32
  }
  func.func @transform_9(%arg0: i32) -> (i32, i32) {
    %c0_i32 = arith.constant 0 : i32
    %c0_i32_0 = arith.constant 0 : i32
    return %c0_i32, %arg0 : i32, i32
  }
}

</mosaic_0001>

<bundles_post_ra>
// kernel: tpu_custom_call.1
= control target key start
LH: loop header
LB: loop body
LE: loop exit
PB: predicated region body
PF: predicated region fallthrough
CT: control target
= control target key end

     0   :  { %15 = vsyncpa [#allocation4], 0  ;;  %s662_s0 = inlined_call_operand.vmem [shape: f32[2,16], index: 0, kind: input, shape index: {}]   ;;  %s663_s1 = inlined_call_operand.vmem [shape: f32[2,8], index: 1, kind: input, shape index: {}]   ;;  %s664_s2 = inlined_call_operand.hbm [shape: f32[16,32], index: 2, kind: input, shape index: {}]   ;;  %s665_s3 = inlined_call_operand.vmem [shape: f32[8,32], index: 3, kind: input, shape index: {}]   ;;  %s666_s4 = inlined_call_operand.vmem [shape: f32[1,32], index: 4, kind: input, shape index: {}]   ;;  %s667_s5 = inlined_call_operand.hbm [shape: f32[32,32], index: 5, kind: input, shape index: {}]   ;;  %s668_s6 = inlined_call_operand.vmem [shape: f32[1,32], index: 6, kind: input, shape index: {}]   ;;  %s669_s7 = inlined_call_operand.vmem [shape: f32[1,32], index: 7, kind: input, shape index: {}]   ;;  %s670_s8 = inlined_call_operand.<no memory space> [shape: f32[1,1], index: 8, kind: input, shape index: {}]   ;;  %s671_s9 = inlined_call_operand.hbm [shape: f32[1,2], index: 9, kind: output, shape index: {}]  }
   0x1   :  { %16 = vsyncpa [#allocation7], 0 }
   0x2   :  { %17 = vsyncpa [#allocation5], 0  ;;  %s543_s30 = smov [#allocation3]   ;;  %s471_s13 = scalar_lea.hbm %s664_s2, 256 }
   0x3   :  { %s27_s10 = sshll.u32 %s543_s30, 4  ;;  %p472_p0 = scmp.ne.s32.totalorder %s664_s2, %s471_s13  ;;  %s28_s10 = int_to_ptr.vmem [resolvable:$true] %s27_s10 }
   0x4   :  { %p475_p1 = scmp.lt.u32.totalorder %s471_s13, %s664_s2 }
   0x6   :  { %p477_p2 = pnand %p475_p1, %p472_p0 }
   0x8   :  { %480 = shalt.err (!%p477_p2)
}
   0x9   :  { %s481_s18 = scalar_lea.vmem %s28_s10, 256  ;;  %p486_p4 = scmp.lt.s32.totalorder %s28_s10, %s28_s10 }
   0xa   :  { %p482_p3 = scmp.ne.s32.totalorder %s28_s10, %s481_s18  ;;  %p487_p5 = scmp.lt.s32.totalorder %s481_s18, %s481_s18 }
   0xc   :  { %p488_p6 = por %p487_p5, %p486_p4 }
   0xe   :  { %p489_p7 = pnand %p488_p6, %p482_p3 }
  0x10   :  { %492 = shalt.err (!%p489_p7)
}
  0x11   :  { %s544_s19 = smov 128   ;;  %s545_s20 = smov 8  }
  0x12   :  { %33 = dma.hbm_to_vmem [thread:$0]  %s664_s2, 256, %s28_s10, [#allocation4], %s544_s19, %s544_s19, %s545_s20  }
  0x13   :  { %s546_s23 = smov [#allocation6]   ;;  %s493_s27 = scalar_lea.hbm %s667_s5, 512 }
  0x14   :  { %s43_s24 = sshll.u32 %s546_s23, 4  ;;  %p494_p8 = scmp.ne.s32.totalorder %s667_s5, %s493_s27  ;;  %s44_s24 = int_to_ptr.vmem [resolvable:$true] %s43_s24 }
  0x15   :  { %p497_p9 = scmp.lt.u32.totalorder %s493_s27, %s667_s5 }
  0x17   :  { %p499_p10 = pnand %p497_p9, %p494_p8 }
  0x19   :  { %502 = shalt.err (!%p499_p10)
}
  0x1a   :  { %s503_s12 = scalar_lea.vmem %s44_s24, 512  ;;  %p508_p12 = scmp.lt.s32.totalorder %s44_s24, %s44_s24 }
  0x1b   :  { %p504_p11 = scmp.ne.s32.totalorder %s44_s24, %s503_s12  ;;  %p509_p13 = scmp.lt.s32.totalorder %s503_s12, %s503_s12 }
  0x1d   :  { %p510_p0 = por %p509_p13, %p508_p12 }
  0x1f   :  { %p511_p1 = pnand %p510_p0, %p504_p11 }
  0x21   :  { %514 = shalt.err (!%p511_p1)
}
  0x22   :  { %49 = dma.hbm_to_vmem [thread:$0]  %s667_s5, 512, %s44_s24, [#allocation7], %s544_s19, %s544_s19, %s545_s20  }
  0x23   :  { %537 = dma.done.wait [#allocation4], 256  }
  0x24   :  { %538 = vsyncadd [#allocation4], 4294967040 }
  0x25   :  { %539 = dma.done.wait [#allocation7], 512  }
  0x26   :  { %540 = vsyncadd [#allocation7], 4294966784  ;;  %v547_v0 = vmov 0.0|0.0   ;;  %v548_v1 = vmov 0.0   ;;  %vm549_vm0 = vmmov 0   ;;  %vm67_vm1 = vcmask 64512  }
  0x27   :  { %454 = vmatprep.subr.bf16.mxu1 %v547_v0  ;;  %426 = vmatprep.subr.mxu0 %v548_v1  ;;  %v63_v2 = vld [vmem:[#allocation3] sm:$0xff]  ;;  %v64_v3 = vld [vmem:[#allocation3 + $0x8] sm:$0xff]  ;;  %vm141_vm2 = vcmask 130048   ;;  %v224_v8 = vld [vmem:[#allocation6] sm:$0xff]  ;;  %vm235_vm3 = vcmask 261120   ;;  %v312_v28 = vstv %s670_s8  ;;  %s550_s22 = smov [#allocation8]  }
  0x28   :  { %428 = vmatprep.mubr.msk.f32.mxu0 %vm549_vm0, %v548_v1  ;;  %435 = vmatprep.mubr.msk.f32.mxu1 %vm549_vm0, %v548_v1  ;;  %v66_v4 = vld [vmem:[%s665_s3] sm:$0xff]  ;;  %v455_v5 = vpack.c.bf16 %v64_v3, %v63_v2  ;;  %v225_v9 = vld [vmem:[#allocation6 + $0x8] sm:$0xff]  ;;  %v227_v12 = vld [vmem:[#allocation6 + $0x18] sm:$0xff]  ;;  %s397_s23 = sshll.u32 %s550_s22, 4  ;;  %vm389_vm4 = vcmask 8192   ;;  %s398_s23 = int_to_ptr.vmem [resolvable:$true] %s397_s23 }
  0x29   :  { %427 = vmatpush3.msra.mxu0 %v66_v4  ;;  %v65_v6 = vld [vmem:[%s663_s1] sm:$0x3]  ;;  %v458_v10 = vpack.c.bf16 %v225_v9, %v224_v8  ;;  %s519_s24 = scalar_lea.vmem %s398_s23, 32  ;;  %p520_p3 = scmp.lt.s32.totalorder %s398_s23, %s398_s23 }
  0x2a   :  { %429 = vmatmul.mubr.msk.f32.vlgmr.msra.gmra.mrb[0].mxu0 %vm67_vm1, %v65_v6  ;;  %457 = vmatprep.subr.bf16.mxu0 %v547_v0  ;;  %v62_v7 = vld [vmem:[%s662_s0] sm:$0x3] }
  0x2b   :  { %456 = vmatpush3.bf16.msra.mxu1 %v455_v5  ;;  %446 = vmatprep.mubr.msk.f32.mxu0 %vm549_vm0, %v548_v1  ;;  %v226_v11 = vld [vmem:[#allocation6 + $0x10] sm:$0xff] }
  0x2c   :  { %449 = vmatprep.subr.mxu1 %v548_v1  ;;  %459 = vmatpush3.bf16.msra.mxu0 %v458_v10  ;;  %v461_v13 = vpack.c.bf16 %v227_v12, %v226_v11  ;;  %v409_v17 = vld [vmem:[%s666_s4] ss:$0 sm:$0xff] }
  0x2d   :  { %460 = vmatprep.subr.bf16.mxu0 %v547_v0  ;;  %v410_v22 = vld [vmem:[%s668_s6] ss:$0 sm:$0xff]  ;;  %s515_s6 = scalar_lea.vmem %s398_s23, 16 }
  0x2e   :  { %436 = vmatmul.mubr.msk.f32.vlgmr.msra.gmra.mrb[0].mxu1 %vm141_vm2, %v62_v7  ;;  %v310_v27 = vld [vmem:[%s669_s7] sm:$0x1]  ;;  %p516_p2 = scmp.ne.s32.totalorder %s398_s23, %s515_s6  ;;  %p521_p4 = scmp.lt.s32.totalorder %s519_s24, %s515_s6 }
  0x2f   :  { %451 = vmatprep.mubr.msk.f32.mxu1 %vm549_vm0, %v548_v1 }
  0x30   :  { %462 = vmatpush3.bf16.msra.mxu0 %v461_v13  ;;  %p522_p5 = por %p521_p4, %p520_p3 }
  0x32   :  { %p523_p6 = pnand %p522_p5, %p516_p2 }
  0xfd   :  { %v137_v14 = vpop.f32.mrb[0].mxu0 }
  0xfe   :  { %v430_v15 = vpop.f32.mrb[1].mxu0 }
 0x101   :  { %v211_v16 = vpop.f32.mrb[0].mxu1 }
 0x102   :  { %v212_v18 = vadd.f32 %v211_v16, %v137_v14  ;;  %v437_v19 = vpop.f32.mrb[1].mxu1 }
 0x104   :  { %v222_v20 = vadd.f32 %v409_v17, %v212_v18 }
 0x106   :  { %v223_v21 = vmax.f32 %v222_v20, 0.0 }
 0x108   :  { %447 = vmatmul.mubr.msk.f32.vlgmr.msra.gmra.mrb[2].mxu0 %vm235_vm3, %v223_v21 }
 0x1db   :  { %v305_v23 = vpop.f32.mrb[2].mxu0 }
 0x1dc   :  { %v306_v24 = vadd.f32 %v410_v22, %v305_v23  ;;  %v448_v25 = vpop.f32.mrb[3].mxu0 }
 0x1de   :  { %v309_v26 = vmax.f32 %v306_v24, 0.0 }
 0x1e0   :  { %450 = vmatpush3.xpose.msk.msra.mxu1 %vm235_vm3, %v309_v26 }
 0x1e3   :  { %452 = vmatmul.mubr.msk.f32.vlgmr.msra.gmra.mrb[2].mxu1 %vm235_vm3, %v310_v27 }
 0x2b6   :  { %v385_v29 = vpop.f32.mrb[2].mxu1 }
 0x2b7   :  { %v386_v30 = vadd.f32 %v385_v29, %v312_v28  ;;  %v453_v31 = vpop.f32.mrb[3].mxu1 }
 0x2b9   :  { %390 = vst.msk [vmem:[#allocation8] sm:$0x1] %vm389_vm4, %v386_v30 }
 0x2ba   :  { %526 = shalt.err (!%p523_p6)
}
 0x2bb   :  { %s527_s8 = scalar_lea.hbm %s671_s9, 16 }
 0x2bc   :  { %p528_p7 = scmp.ne.s32.totalorder %s671_s9, %s527_s8  ;;  %p531_p8 = scmp.lt.u32.totalorder %s527_s8, %s671_s9 }
 0x2be   :  { %p533_p9 = pnand %p531_p8, %p528_p7 }
 0x2c0   :  { %536 = shalt.err (!%p533_p9)
}
 0x2c1   :  { %400 = dma.vmem_to_hbm [thread:$0]  %s398_s23, 16, %s671_s9, [#allocation5]  }
 0x2c2   :  { %541 = dma.done.wait [#allocation5], 16  }
 0x2c3   :  { %542 = vsyncadd [#allocation5], 4294967280 }
 0x2c4   :  { %404 = vsyncpa [#allocation4], 1 }
 0x2c5   :  { %405 = vsyncpa [#allocation7], 1 }
 0x2c6   :  { %406 = vsyncpa [#allocation5], 1 }

</bundles_post_ra>
